<compile_context>
chip_gen: v7x
topology: tpu7x:2x2x1
jax: 0.10.0
libtpu: 0.0.40
codegen_flags: <defaults>
</compile_context>

<pallas_src>
import numpy as np
import jax
import jax.numpy as jnp
from jax import lax
from jax.experimental import pallas as pl
from jax.experimental.pallas import tpu as pltpu


def _round_up(x, m):
    return (x + m - 1) // m * m


def _selfgate_kernel(x1_ref, x2_ref, w_ref, b_ref, ps_ref, o_ref):
    # x1_ref, x2_ref : (TM, I)    per-tile inputs
    # w_ref          : (2I, 2I)   torch-layout weight (out_features, in_features), resident
    # b_ref          : (1, 2I)    bias, resident
    # ps_ref         : (2I, I)    0/1 adjacent-pair selection matrix, resident
    # o_ref          : (TM, I)    output tile
    isize = x1_ref.shape[-1]

    x1 = x1_ref[...]
    x2 = x2_ref[...]

    # z = [x1 | x2] @ W.T + b, split over the contraction (K) axis so the
    # concatenated tensor never exists.  Contract x's dim 1 against W's dim 1
    # (i.e. W consumed in place, no transpose materialized).
    dn = (((1,), (1,)), ((), ()))
    z = lax.dot_general(x1, w_ref[:, pl.ds(0, isize)], dn,
                        preferred_element_type=jnp.float32)
    z = z + lax.dot_general(x2, w_ref[:, pl.ds(isize, isize)], dn,
                            preferred_element_type=jnp.float32)
    z = z + b_ref[...].astype(jnp.float32)

    g = jax.nn.sigmoid(z)                               # (TM, 2I), EUP

    # prod = g * c, expressed per half of c.
    p1 = g[:, :isize] * x1.astype(jnp.float32)          # (TM, I)
    p2 = g[:, isize:] * x2.astype(jnp.float32)          # (TM, I)

    # Adjacent-pair sum: out = prod @ pair_sel, split to match the halves (MXU).
    out = jnp.dot(p1, ps_ref[pl.ds(0, isize), :],
                  preferred_element_type=jnp.float32)
    out = out + jnp.dot(p2, ps_ref[pl.ds(isize, isize), :],
                        preferred_element_type=jnp.float32)

    o_ref[...] = out.astype(o_ref.dtype)


def self_gate(x1, x2, w, b, *, tm=512):
    """x1, x2: (..., isize); w: (2*isize, 2*isize) torch (out, in); b: (2*isize,)."""
    isize = x1.shape[-1]
    lead = x1.shape[:-1]
    m = int(np.prod(lead)) if lead else 1

    x1f = x1.reshape(m, isize)
    x2f = x2.reshape(m, isize)

    # Tile size: multiple of 8 sublanes, capped by requested tm; pad M to a multiple.
    tm_eff = min(tm, _round_up(m, 8))
    m_pad = _round_up(m, tm_eff)
    if m_pad != m:
        pad = m_pad - m
        x1f = jnp.pad(x1f, ((0, pad), (0, 0)))
        x2f = jnp.pad(x2f, ((0, pad), (0, 0)))

    b2 = b.reshape(1, 2 * isize)

    # Precomputed 0/1 selection matrix: pair_sel[r, c] = (r // 2 == c).
    rows = np.arange(2 * isize)[:, None]
    cols = np.arange(isize)[None, :]
    pair_sel = jnp.asarray(rows // 2 == cols, dtype=jnp.float32)

    dsize = jnp.dtype(x1.dtype).itemsize
    flops = 2 * m_pad * (2 * isize) * (2 * isize) + 2 * m_pad * (2 * isize) * isize
    bytes_accessed = ((2 * m_pad * isize + m_pad * isize) * dsize        # x1, x2, out
                      + (4 * isize * isize + 2 * isize) * jnp.dtype(w.dtype).itemsize
                      + 2 * isize * isize * 4)                           # pair_sel (f32)
    cost = pl.CostEstimate(flops=flops,
                           transcendentals=m_pad * 2 * isize,
                           bytes_accessed=bytes_accessed)

    grid = (m_pad // tm_eff,)
    out = pl.pallas_call(
        _selfgate_kernel,
        out_shape=jax.ShapeDtypeStruct((m_pad, isize), x1.dtype),
        grid=grid,
        in_specs=[
            pl.BlockSpec((tm_eff, isize), lambda i: (i, 0)),             # x1 tile
            pl.BlockSpec((tm_eff, isize), lambda i: (i, 0)),             # x2 tile
            pl.BlockSpec((2 * isize, 2 * isize), lambda i: (0, 0)),      # W (resident)
            pl.BlockSpec((1, 2 * isize), lambda i: (0, 0)),              # b (resident)
            pl.BlockSpec((2 * isize, isize), lambda i: (0, 0)),          # pair_sel (resident)
        ],
        out_specs=pl.BlockSpec((tm_eff, isize), lambda i: (i, 0)),
        compiler_params=pltpu.CompilerParams(
            dimension_semantics=("parallel",),
            vmem_limit_bytes=48 * 1024 * 1024,   # < v7x 64 MiB physical, > default scoped
        ),
        cost_estimate=cost,
    )(x1f, x2f, w, b2, pair_sel)

    if m_pad != m:
        out = out[:m]
    return out.reshape(*lead, isize)


def _reference(x1, x2, w, b):
    c = jnp.concatenate([x1, x2], axis=-1)
    y = jax.nn.sigmoid(c @ w.T + b) * c
    return y.reshape(*x1.shape, 2).sum(-1)


if __name__ == "__main__":
    isize = 32
    key = jax.random.PRNGKey(0)
    k_w, k_b, k_x1, k_x2 = jax.random.split(key, 4)

    # Deterministic synthetic Linear(2*isize, 2*isize) parameters.
    w = jax.random.normal(k_w, (2 * isize, 2 * isize), jnp.float32) * 0.1
    b = jax.random.normal(k_b, (2 * isize,), jnp.float32) * 0.1

    # Case 1: M = 16 with TM = 8 -> 2-step parallel grid (exercises tiling).
    x1 = jax.random.normal(k_x1, (2, 8, isize), jnp.float32)
    x2 = jax.random.normal(k_x2, (2, 8, isize), jnp.float32)
    out = jax.block_until_ready(self_gate(x1, x2, w, b, tm=8))
    np.testing.assert_allclose(np.asarray(out), np.asarray(_reference(x1, x2, w, b)),
                               rtol=1e-5, atol=1e-5)

    # Case 2: M = 15 (not a tile multiple) -> exercises the pad / slice path.
    x1b = jax.random.normal(jax.random.PRNGKey(1), (3, 5, isize), jnp.float32)
    x2b = jax.random.normal(jax.random.PRNGKey(2), (3, 5, isize), jnp.float32)
    outb = jax.block_until_ready(self_gate(x1b, x2b, w, b, tm=8))
    np.testing.assert_allclose(np.asarray(outb), np.asarray(_reference(x1b, x2b, w, b)),
                               rtol=1e-5, atol=1e-5)

    print("KERNEL_OK")
</pallas_src>

<mosaic_0001>
module attributes {stable_mosaic.version = 11 : i64} {
  func.func @_selfgate_kernel(%arg0: i32, %arg1: memref<8x32xf32, #tpu.memory_space<vmem>>, %arg2: memref<8x32xf32, #tpu.memory_space<vmem>>, %arg3: memref<64x64xf32, #tpu.memory_space<vmem>>, %arg4: memref<1x64xf32, #tpu.memory_space<vmem>>, %arg5: memref<64x32xf32, #tpu.memory_space<vmem>>, %arg6: memref<8x32xf32, #tpu.memory_space<vmem>>) attributes {dimension_semantics = [#tpu.dimension_semantics<parallel>], iteration_bounds = array<i64: 2>, scalar_prefetch = 0 : i64, scratch_operands = 0 : i64, tpu.core_type = #tpu.core_type<tc>, window_params = [{transform_indices = @transform_0, window_bounds = array<i64: 8, 32>}, {transform_indices = @transform_1, window_bounds = array<i64: 8, 32>}, {pipeline_mode = #tpu.pipeline_mode<synchronous>, transform_indices = @transform_2, window_bounds = array<i64: 64, 64>}, {pipeline_mode = #tpu.pipeline_mode<synchronous>, transform_indices = @transform_3, window_bounds = array<i64: 1, 64>}, {pipeline_mode = #tpu.pipeline_mode<synchronous>, transform_indices = @transform_4, window_bounds = array<i64: 64, 32>}, {transform_indices = @transform_5, window_bounds = array<i64: 8, 32>}]} {
    %c0 = arith.constant 0 : index
    %c0_0 = arith.constant 0 : index
    %0 = vector.load %arg1[%c0, %c0_0] : memref<8x32xf32, #tpu.memory_space<vmem>>, vector<8x32xf32>
    %c0_1 = arith.constant 0 : index
    %c0_2 = arith.constant 0 : index
    %1 = vector.load %arg2[%c0_1, %c0_2] : memref<8x32xf32, #tpu.memory_space<vmem>>, vector<8x32xf32>
    %c0_3 = arith.constant 0 : index
    %c0_4 = arith.constant 0 : index
    %2 = vector.load %arg3[%c0_3, %c0_4] : memref<64x64xf32, #tpu.memory_space<vmem>>, vector<64x32xf32>
    %cst = arith.constant dense<0.000000e+00> : vector<8x64xf32>
    %3 = tpu.matmul %0, %2, %cst {dimension_numbers = #tpu.dot_dimension_numbers<[1], [1], [0], [0], [0, 0, 1, 0], [], []>} : vector<8x32xf32>, vector<64x32xf32>, vector<8x64xf32> -> vector<8x64xf32>
    %c0_5 = arith.constant 0 : index
    %c32 = arith.constant 32 : index
    %4 = vector.load %arg3[%c0_5, %c32] : memref<64x64xf32, #tpu.memory_space<vmem>>, vector<64x32xf32>
    %cst_6 = arith.constant dense<0.000000e+00> : vector<8x64xf32>
    %5 = tpu.matmul %1, %4, %cst_6 {dimension_numbers = #tpu.dot_dimension_numbers<[1], [1], [0], [0], [0, 0, 1, 0], [], []>} : vector<8x32xf32>, vector<64x32xf32>, vector<8x64xf32> -> vector<8x64xf32>
    %6 = arith.addf %3, %5 : vector<8x64xf32>
    %c0_7 = arith.constant 0 : index
    %c0_8 = arith.constant 0 : index
    %7 = vector.load %arg4[%c0_7, %c0_8] : memref<1x64xf32, #tpu.memory_space<vmem>>, vector<1x64xf32>
    %8 = vector.broadcast %7 : vector<1x64xf32> to vector<8x64xf32>
    %9 = arith.addf %6, %8 : vector<8x64xf32>
    %10 = arith.negf %9 : vector<8x64xf32>
    %11 = math.exp %10 : vector<8x64xf32>
    %cst_9 = arith.constant 1.000000e+00 : f32
    %12 = vector.broadcast %cst_9 : f32 to vector<8x64xf32>
    %13 = arith.addf %12, %11 : vector<8x64xf32>
    %14 = arith.divf %12, %13 : vector<8x64xf32>
    %15 = vector.extract_strided_slice %14 {offsets = [0, 0], sizes = [8, 32], strides = [1, 1]} : vector<8x64xf32> to vector<8x32xf32>
    %16 = arith.mulf %15, %0 : vector<8x32xf32>
    %17 = vector.extract_strided_slice %14 {offsets = [0, 32], sizes = [8, 32], strides = [1, 1]} : vector<8x64xf32> to vector<8x32xf32>
    %18 = arith.mulf %17, %1 : vector<8x32xf32>
    %c0_10 = arith.constant 0 : index
    %c0_11 = arith.constant 0 : index
    %19 = vector.load %arg5[%c0_10, %c0_11] : memref<64x32xf32, #tpu.memory_space<vmem>>, vector<32x32xf32>
    %cst_12 = arith.constant dense<0.000000e+00> : vector<8x32xf32>
    %20 = tpu.matmul %16, %19, %cst_12 {dimension_numbers = #tpu.dot_dimension_numbers<[1], [0], [0], [1], [0, 0, 1, 1], [], []>} : vector<8x32xf32>, vector<32x32xf32>, vector<8x32xf32> -> vector<8x32xf32>
    %c32_13 = arith.constant 32 : index
    %c0_14 = arith.constant 0 : index
    %21 = vector.load %arg5[%c32_13, %c0_14] : memref<64x32xf32, #tpu.memory_space<vmem>>, vector<32x32xf32>
    %cst_15 = arith.constant dense<0.000000e+00> : vector<8x32xf32>
    %22 = tpu.matmul %18, %21, %cst_15 {dimension_numbers = #tpu.dot_dimension_numbers<[1], [0], [0], [1], [0, 0, 1, 1], [], []>} : vector<8x32xf32>, vector<32x32xf32>, vector<8x32xf32> -> vector<8x32xf32>
    %23 = arith.addf %20, %22 : vector<8x32xf32>
    %c0_16 = arith.constant 0 : index
    %c0_17 = arith.constant 0 : index
    %24 = vector.load %arg6[%c0_16, %c0_17] : memref<8x32xf32, #tpu.memory_space<vmem>>, vector<8x32xf32>
    tpu.vector_store %arg6[%c0_16, %c0_17], %23 {strides = array<i32>} : memref<8x32xf32, #tpu.memory_space<vmem>>, vector<8x32xf32>,
    return
  }
  func.func @transform_0(%arg0: i32) -> (i32, i32) {
    %c0_i32 = arith.constant 0 : i32
    %c0_i32_0 = arith.constant 0 : i32
    return %arg0, %c0_i32 : i32, i32
  }
  func.func @transform_1(%arg0: i32) -> (i32, i32) {
    %c0_i32 = arith.constant 0 : i32
    %c0_i32_0 = arith.constant 0 : i32
    return %arg0, %c0_i32 : i32, i32
  }
  func.func @transform_2(%arg0: i32) -> (i32, i32) {
    %c0_i32 = arith.constant 0 : i32
    %c0_i32_0 = arith.constant 0 : i32
    %c0_i32_1 = arith.constant 0 : i32
    return %c0_i32, %c0_i32_0 : i32, i32
  }
  func.func @transform_3(%arg0: i32) -> (i32, i32) {
    %c0_i32 = arith.constant 0 : i32
    %c0_i32_0 = arith.constant 0 : i32
    %c0_i32_1 = arith.constant 0 : i32
    return %c0_i32, %c0_i32_0 : i32, i32
  }
  func.func @transform_4(%arg0: i32) -> (i32, i32) {
    %c0_i32 = arith.constant 0 : i32
    %c0_i32_0 = arith.constant 0 : i32
    %c0_i32_1 = arith.constant 0 : i32
    return %c0_i32, %c0_i32_0 : i32, i32
  }
  func.func @transform_5(%arg0: i32) -> (i32, i32) {
    %c0_i32 = arith.constant 0 : i32
    %c0_i32_0 = arith.constant 0 : i32
    return %arg0, %c0_i32 : i32, i32
  }
}

</mosaic_0001>

<bundles_post_ra>
// kernel: tpu_custom_call.1
= control target key start
LH: loop header
LB: loop body
LE: loop exit
PB: predicated region body
PF: predicated region fallthrough
CT: control target
= control target key end

     0   :  { %10 = vsyncpa [#allocation3], 0  ;;  %s1247_s0 = inlined_call_operand.vmem [shape: f32[16,32], index: 0, kind: input, shape index: {}]   ;;  %s1248_s1 = inlined_call_operand.vmem [shape: f32[16,32], index: 1, kind: input, shape index: {}]   ;;  %s1249_s2 = inlined_call_operand.vmem [shape: f32[64,64], index: 2, kind: input, shape index: {}]   ;;  %s1250_s3 = inlined_call_operand.vmem [shape: f32[1,64], index: 3, kind: input, shape index: {}]   ;;  %s1251_s4 = inlined_call_operand.vmem [shape: f32[64,32], index: 4, kind: input, shape index: {}]   ;;  %s1252_s5 = inlined_call_operand.hbm [shape: f32[16,32], index: 5, kind: output, shape index: {}]  }
   0x1   :  { %12 = vsyncpa [#allocation3 + $0x1], 0  ;;  %s1045_s18 = smov 0   ;;  %s1047_s19 = smov 0  }
   0x2   :  { %s1049_s20 = smov 0   ;;  %s1051_s21 = smov 0  }
   0x3 LB: > { %s1066_s22 = sadd.s32 4294967295, %s1007_s21   ;;  %s711_s23 = sadd.s32 4294967294, %s1007_s21   ;;  %s1007_s21 = sphi %s1051_s21, %s1260_s21   ;;  %s1003_s20 = sphi %s1049_s20, %s1259_s20   ;;  %s999_s19 = sphi %s1047_s19, %s1258_s19   ;;  %s995_s18 = sphi %s1045_s18, %s1257_s18  }
   0x4   : > { %s1070_s24 = sadd.s32 1, %s1007_s21   ;;  %s140_s25 = sadd.s32 1, %s1003_s20 }
   0x5   : > { %s137_s26 = ssub.s32 %s1007_s21, %s1070_s24  ;;  %p150_p0 = scmp.ne.s32.totalorder %s1003_s20, %s999_s19 }
   0x6   : > { %p138_p1 = scmp.eq.s32.totalorder %s137_s26, 0  ;;  %p151_p2 = scmp.eq.s32.totalorder %s1066_s22, 1 }
   0x7   : > { %p156_p3 = scmp.ne.s32.totalorder %s999_s19, %s995_s18  ;;  %p157_p4 = scmp.eq.s32.totalorder %s711_s23, 1 }
   0x8   : > { %s1081_s27 = scalar_select %p138_p1, %s1003_s20, %s140_s25  }
   0x9   : > { %p1083_p5 = por %p151_p2, %p150_p0  ;;  %p1087_p6 = por %p157_p4, %p156_p3 }
   0xa   : > { %p714_p7 = scmp.ge.s32.totalorder %s1007_s21, 1  ;;  %p198_p8 = scmp.lt.s32.totalorder %s1007_s21, 3 }
   0xc   : > { %p199_p9 = pnand %p714_p7, %p198_p8 }
   0xd   : > { %v239_v0 = vld [vmem:[%s1249_s2] sm:$0xff] (!%p199_p9)  ;;  %v240_v1 = vld [vmem:[%s1249_s2 + $0x8] sm:$0xff] (!%p199_p9)  ;;  %v241_v2 = vld [vmem:[%s1249_s2 + $0x10] sm:$0xff] (!%p199_p9)  ;;  %vm271_vm0 = vcmask (!%p199_p9), 261120   ;;  %v1009_v8 = vmov (!%p199_p9), 0.0|0.0   ;;  %s1010_s30 = smov (!%p199_p9), 96  }
   0xe   : > { %202 = sbr.rel (%p199_p9) target bundleno = 753 (0x2f1), region = 40  ;;  %v921_v3 = vpack.i.bf16 (!%p199_p9), %v240_v1, %v239_v0  ;;  %v849_v4 = vpack.c.bf16 (!%p199_p9), %v240_v1, %v239_v0  ;;  %v242_v5 = vld [vmem:[%s1249_s2 + $0x18] sm:$0xff] (!%p199_p9)  ;;  %v243_v6 = vld [vmem:[%s1249_s2 + $0x20] sm:$0xff] (!%p199_p9)  ;;  %v244_v7 = vld [vmem:[%s1249_s2 + $0x28] sm:$0xff] (!%p199_p9)  ;;  %848 = vmatprep.subr.bf16.mxu1 (!%p199_p9), %v1009_v8  ;;  %832 = vmatprep.subr.bf16.mxu0 (!%p199_p9), %v1009_v8  ;;  %p229_p10 = scmp.lt.s32.totalorder (!%p199_p9), %s1066_s22, 1  ;;  %vm1011_vm2 = vmmov (!%p199_p9), 0  }
   0xf   : > { %v931_v9 = vpack.i.bf16 (!%p199_p9), %v244_v7, %v243_v6  ;;  %v245_v10 = vld [vmem:[%s1249_s2 + $0x30] sm:$0xff] (!%p199_p9)  ;;  %v246_v11 = vld [vmem:[%s1249_s2 + $0x38] sm:$0xff] (!%p199_p9)  ;;  %vm1121_vm1 = vmpackc.low (!%p199_p9), %vm271_vm0, %vm271_vm0  ;;  %v926_v13 = vpack.i.bf16 (!%p199_p9), %v242_v5, %v241_v2  ;;  %v853_v15 = vpack.c.bf16 (!%p199_p9), %v242_v5, %v241_v2  ;;  %v857_v16 = vpack.c.bf16 (!%p199_p9), %v244_v7, %v243_v6  ;;  %s1013_s11 = smov (!%p199_p9), 32   ;;  %s226_s23 = sand.u32 (!%p199_p9), 1, %s999_s19  }
  0x10   : > { %922 = vrot.lane.b32.xlu0 (!%p199_p9), %v921_v3, %s1010_s30  ;;  %851 = vmatpush3.bf16.xpose.msk.msra.mxu1 (!%p199_p9), %vm1121_vm1, %v849_v4  ;;  %v936_v14 = vpack.i.bf16 (!%p199_p9), %v246_v11, %v245_v10  ;;  %v1012_v17 = vmov (!%p199_p9), 0.0   ;;  %v861_v18 = vpack.c.bf16 (!%p199_p9), %v246_v11, %v245_v10  ;;  %v469_v39 = vld [vmem:[%s1251_s4] sm:$0xff] (!%p199_p9)  ;;  %v470_v40 = vld [vmem:[%s1251_s4 + $0x8] sm:$0xff] (!%p199_p9)  ;;  %v471_v42 = vld [vmem:[%s1251_s4 + $0x10] sm:$0xff] (!%p199_p9)  ;;  %s715_s25 = sshll.u32 (!%p199_p9), %s226_s23, 3  ;;  %s741_s26 = sshll.u32 (!%p199_p9), %s1066_s22, 7 }
  0x11   : > { %932 = vrot.lane.b32.xlu1 (!%p199_p9), %v931_v9, %s1010_s30  ;;  %852 = vmatprep.subr.bf16.mxu1 (!%p199_p9), %v1009_v8  ;;  %v871_v41 = vpack.c.bf16 (!%p199_p9), %v470_v40, %v469_v39  ;;  %v472_v43 = vld [vmem:[%s1251_s4 + $0x18] sm:$0xff] (!%p199_p9)  ;;  %v473_v45 = vld [vmem:[%s1251_s4 + $0x20] sm:$0xff] (!%p199_p9)  ;;  %v474_v46 = vld [vmem:[%s1251_s4 + $0x28] sm:$0xff] (!%p199_p9) }
  0x12   : > { %807 = vmatprep.mubr.msk.f32.mxu1 (!%p199_p9), %vm1011_vm2, %v1012_v17  ;;  %788 = vmatprep.mubr.msk.f32.mxu0 (!%p199_p9), %vm1011_vm2, %v1012_v17  ;;  %v874_v44 = vpack.c.bf16 (!%p199_p9), %v472_v43, %v471_v42  ;;  %v475_v47 = vld [vmem:[%s1251_s4 + $0x30] sm:$0xff] (!%p199_p9)  ;;  %v865_v48 = vpack.c.bf16 (!%p199_p9), %v474_v46, %v473_v45  ;;  %v476_v49 = vld [vmem:[%s1251_s4 + $0x38] sm:$0xff] (!%p199_p9)  ;;  %v736_v52 = vld [vmem:[%s1250_s3] ss:$0 sm:$0xff] (!%p199_p9) }
  0x13   : > { %v868_v50 = vpack.c.bf16 (!%p199_p9), %v476_v49, %v475_v47 }
  0x14   : > { %927 = vrot.lane.b32.xlu0 (!%p199_p9), %v926_v13, %s1010_s30 }
  0x15   : > { %937 = vrot.lane.b32.xlu1 %v936_v14, %s1010_s30  ;;  %s230_s6 = scalar_select %p229_p10, %s1066_s22, 1 }
  0x16   : > { %s1014_s22 = smov [#allocation2]  }
  0x17   : > { %s716_s7 = sshll.u32 %s230_s6, 3  ;;  %s228_s6 = scalar_lea.vmem [#allocation2], %s715_s25 }
  0x18   : > { %855 = vmatpush3.bf16.xpose.msk.msra.mxu1 %vm1121_vm1, %v853_v15  ;;  %s236_s10 = scalar_lea.vmem %s1248_s1, %s716_s7  ;;  %s232_s14 = scalar_lea.vmem %s1247_s0, %s716_s7 }
  0x19   : > { %856 = vmatprep.subr.bf16.mxu1 %v1009_v8  ;;  %v238_v19 = vld [vmem:[%s236_s10] sm:$0xff]  ;;  %s640_s7 = sshll.u32 %s228_s6, 4  ;;  %s627_s10 = scalar_lea.sflag [#allocation3], %s226_s23  ;;  %s1206_s7 = int_to_ptr.vmem [resolvable:$true] %s640_s7 }
  0x1a   : > { %465 = vrot.lane.b32.xlu0 %v238_v19, %s1013_s11  ;;  %v237_v20 = vld [vmem:[%s232_s14] sm:$0xff]  ;;  %s945_s11 = scalar_lea.vmem %s1206_s7, 128  ;;  %s949_s12 = sshll.u32 %s1014_s22, 4  ;;  %s950_s12 = int_to_ptr.vmem [resolvable:$false] %s949_s12 }
  0x1b   : > { %p946_p11 = scmp.ne.s32.totalorder %s1206_s7, %s945_s11  ;;  %s951_s13 = scalar_lea.vmem %s950_s12, 256 }
  0x1c   : > { %p952_p0 = scmp.lt.s32.totalorder %s1206_s7, %s950_s12  ;;  %p953_p1 = scmp.lt.s32.totalorder %s951_s13, %s945_s11 }
  0x1d   : > { %p947_p12 = pnand %p946_p11, %p1083_p5 }
  0x1e   : > { %p954_p2 = por %p953_p1, %p952_p0 }
  0x1f   : > { %p948_p13 = pneg %p947_p12 }
  0x20   : > { %859 = vmatpush3.bf16.xpose.msk.msra.mxu1 %vm1121_vm1, %v857_v16 }
  0x21   : > { %860 = vmatprep.subr.bf16.mxu1 %v1009_v8  ;;  %p955_p3 = pnand %p954_p2, %p948_p13 }
  0x28   : > { %863 = vmatpush3.bf16.xpose.msk.msra.mxu1 %vm1121_vm1, %v861_v18 }
  0x29   : > { %864 = vmatprep.subr.bf16.mxu1 %v1009_v8 }
  0x2f   : > { %808 = vmatmul.mubr.msk.f32.vlgmr.msra.gmra.mrb[0].mxu1 %vm271_vm0, %v237_v20 }
  0x30   : > { %818 = vmatprep.mubr.msk.f32.mxu1 %vm1011_vm2, %v1012_v17  ;;  %866 = vmatpush3.bf16.msra.mxu1 %v865_v48 }
  0x31   : > { %867 = vmatprep.subr.bf16.mxu1 %v1009_v8 }
  0x34   : > { %869 = vmatpush3.bf16.msra.mxu1 %v868_v50 }
  0x82   : > { %v923_v21 = vpop.permute.xlu0 %922 }
  0x83   : > { %v925_v22 = vunpack.i.h.bf16 %v923_v21  ;;  %v924_v23 = vunpack.i.l.bf16 %v923_v21  ;;  %v933_v29 = vpop.permute.xlu1 %932 }
  0x84   : > { %v935_v30 = vunpack.i.h.bf16 %v933_v29  ;;  %v934_v31 = vunpack.i.l.bf16 %v933_v29 }
  0x85   : > { %v833_v24 = vpack.c.bf16 %v925_v22, %v924_v23 }
  0x86   : > { %v928_v25 = vpop.permute.xlu0 %927  ;;  %v841_v32 = vpack.c.bf16 %v935_v30, %v934_v31 }
  0x87   : > { %835 = vmatpush3.bf16.xpose.msk.msra.mxu0 %vm1121_vm1, %v833_v24  ;;  %v930_v26 = vunpack.i.h.bf16 %v928_v25  ;;  %v929_v27 = vunpack.i.l.bf16 %v928_v25  ;;  %v938_v33 = vpop.permute.xlu1 %937 }
  0x88   : > { %836 = vmatprep.subr.bf16.mxu0 %v1009_v8  ;;  %v940_v34 = vunpack.i.h.bf16 %v938_v33  ;;  %v939_v35 = vunpack.i.l.bf16 %v938_v33 }
  0x89   : > { %v837_v28 = vpack.c.bf16 %v930_v26, %v929_v27 }
  0x8a   : > { %v845_v36 = vpack.c.bf16 %v940_v34, %v939_v35 }
  0x8c   : > { %v466_v59 = vpop.permute.xlu0 %465 }
  0x8f   : > { %839 = vmatpush3.bf16.xpose.msk.msra.mxu0 %vm1121_vm1, %v837_v28 }
  0x90   : > { %840 = vmatprep.subr.bf16.mxu0 %v1009_v8 }
  0x97   : > { %843 = vmatpush3.bf16.xpose.msk.msra.mxu0 %vm1121_vm1, %v841_v32 }
  0x98   : > { %844 = vmatprep.subr.bf16.mxu0 %v1009_v8 }
  0x9f   : > { %847 = vmatpush3.bf16.xpose.msk.msra.mxu0 %vm1121_vm1, %v845_v36 }
  0xa0   : > { %870 = vmatprep.subr.bf16.mxu0 %v1009_v8 }
  0xa6   : > { %789 = vmatmul.mubr.msk.f32.vlgmr.msra.gmra.mrb[0].mxu0 %vm271_vm0, %v238_v19 }
  0xa7   : > { %829 = vmatprep.mubr.msk.f32.mxu0 %vm1011_vm2, %v1012_v17  ;;  %872 = vmatpush3.bf16.msra.mxu0 %v871_v41 }
  0xa8   : > { %873 = vmatprep.subr.bf16.mxu0 %v1009_v8 }
  0xab   : > { %875 = vmatpush3.bf16.msra.mxu0 %v874_v44 }
 0x102   : > { %v446_v37 = vpop.f32.mrb[0].mxu1 }
 0x103   : > { %v809_v38 = vpop.f32.mrb[1].mxu1 }
 0x179   : > { %v357_v51 = vpop.f32.mrb[0].mxu0 }
 0x17a   : > { %v447_v53 = vadd.f32 %v446_v37, %v357_v51  ;;  %v790_v54 = vpop.f32.mrb[1].mxu0 }
 0x17c   : > { %v457_v55 = vadd.f32 %v736_v52, %v447_v53 }
 0x17e   : > { %v737_v56 = vmul.f32 -1.442695, %v457_v55 }
 0x180   : > { %941 = vpow2.f32 %v737_v56 }
 0x18a   : > { %v942_v57 = vpop.eup %941 }
 0x18b   : > { %v461_v58 = vadd.f32 1.0, %v942_v57 }
 0x18d   : > { %943 = vrcp.f32 %v461_v58 }
 0x197   : > { %v944_v60 = vpop.eup %943 }
 0x198   : > { %v468_v61 = vmul.f32 %v944_v60, %v466_v59  ;;  %v464_v62 = vmul.f32 %v944_v60, %v237_v20 }
 0x19a   : > { %478 = vrot.lane.b32.xlu1 %v468_v61, %s1010_s30  ;;  %830 = vmatmul.mubr.msk.f32.vlgmr.msra.gmra.mrb[2].mxu0 %vm271_vm0, %v464_v62  ;;  %s1204_s30 = scalar_lea.hbm %s1252_s5, %s741_s26 }
 0x20c   : > { %v479_v63 = vpop.permute.xlu1 %478 }
 0x20d   : > { %819 = vmatmul.mubr.msk.f32.vlgmr.msra.gmra.mrb[2].mxu1 %vm271_vm0, %v479_v63 }
 0x26d   : > { %v621_v0 = vpop.f32.mrb[2].mxu0 }
 0x26e   : > { %v831_v1 = vpop.f32.mrb[3].mxu0 }
 0x2e0   : > { %v548_v2 = vpop.f32.mrb[2].mxu1 }
 0x2e1   : > { %v622_v3 = vadd.f32 %v621_v0, %v548_v2  ;;  %v820_v4 = vpop.f32.mrb[3].mxu1 }
 0x2e3   : > { %625 = vst.msk [vmem:[%s228_s6] sm:$0xff] %vm271_vm0, %v622_v3 }
 0x2e4   : > { %958 = shalt.err (!%p955_p3)
}
 0x2e5   : > { %s959_s14 = scalar_lea.hbm %s1204_s30, 128  ;;  %s963_s17 = scalar_lea.hbm %s1252_s5, 256 }
 0x2e6   : > { %p960_p4 = scmp.ne.s32.totalorder %s1204_s30, %s959_s14  ;;  %p964_p9 = scmp.lt.u32.totalorder %s1204_s30, %s1252_s5 }
 0x2e7   : > { %p965_p10 = scmp.lt.u32.totalorder %s963_s17, %s959_s14  ;;  %p967_p12 = scmp.lt.u32.totalorder %s959_s14, %s1204_s30 }
 0x2e8   : > { %p961_p7 = pnand %p960_p4, %p1083_p5 }
 0x2e9   : > { %p966_p11 = por %p965_p10, %p964_p9 }
 0x2ea   : > { %p962_p8 = pneg %p961_p7 }
 0x2eb   : > { %p968_p13 = por %p967_p12, %p966_p11 }
 0x2ed   : > { %p969_p0 = pnand %p968_p13, %p962_p8 }
 0x2ef   : > { %972 = shalt.err (!%p969_p0)
}
 0x2f0   : > { %877 = dma.vmem_to_hbm [thread:$0]  (%p1083_p5), %s1206_s7, 128, %s1204_s30, %s627_s10  }
 0x2f1 PF: > { %p883_p1 = scmp.ge.s32.totalorder %s1007_s21, 2  ;;  %s652_s26 = sand.u32 1, %s995_s18  }
 0x2f2   : > { %s653_s6 = scalar_lea.sflag [#allocation3], %s652_s26 }
 0x2f3   : > { %p880_p2 = pnand %p883_p1, %p1087_p6 }
 0x2f5   : > { %990 = dma.done.wait (!%p880_p2), %s653_s6, 128  }
 0x2f6   : > { %992 = vsyncadd (!%p880_p2), %s653_s6, 4294967168  ;;  %p15_p3 = scmp.ge.s32.totalorder %s1070_s24, 4   ;;  %s1257_s18 = smov %s999_s19 }
 0x2f7   : > { %s1258_s19 = smov %s1003_s20  ;;  %s1259_s20 = smov %s1081_s27 }
 0x2f8   : > { %s1260_s21 = smov %s1070_s24  ;;  %17 = sbr.rel (!%p15_p3) target bundleno = 3 (0x3), region = 78 }
 0x2ff   :  { %658 = vsyncpa [#allocation3], 1 }
 0x300   :  { %660 = vsyncpa [#allocation3 + $0x1], 1 }

</bundles_post_ra>
